<compile_context>
chip_gen: v7x
topology: tpu7x:2x2x1
jax: 0.10.0
libtpu: 0.0.40
codegen_flags: <defaults>
</compile_context>

<pallas_src>
import functools

import jax
import jax.numpy as jnp
from jax.experimental import pallas as pl
from jax.experimental.pallas import tpu as pltpu

LN_EPS = 1e-5


def _round_up(x, m):
    return ((x + m - 1) // m) * m


def _pooler_end_logits_kernel(hs_ref, sp_ref, w0a_ref, w0b_ref, b0_ref,
                              g_ref, beta_ref, w1_ref, b1_ref, out_ref):
    # hs_ref:   (TM, H1)  hidden_states row tile
    # sp_ref:   (TM, H2)  start_positions row tile
    # w0a_ref:  (H1, Hout) top half of dense_0 weight (in x out layout)
    # w0b_ref:  (H2, Hout) bottom half of dense_0 weight
    # b0_ref:   (1, Hout)
    # g_ref:    (1, Hout)  LayerNorm gamma
    # beta_ref: (1, Hout)  LayerNorm beta
    # w1_ref:   (Hout, Cp) dense_1 weight, lane-padded to Cp
    # b1_ref:   (1, Cp)
    # out_ref:  (TM, Cp)

    # dense_0 as two half-K matmuls (== matmul of the concatenated input),
    # MXU with f32 accumulation.
    h = (jnp.dot(hs_ref[...], w0a_ref[...], preferred_element_type=jnp.float32)
         + jnp.dot(sp_ref[...], w0b_ref[...], preferred_element_type=jnp.float32)
         + b0_ref[...].astype(jnp.float32))

    # tanh activation (EUP), on the f32 accumulator.
    t = jnp.tanh(h)

    # LayerNorm over the last dim (biased variance, eps=1e-5, affine).
    mean = jnp.mean(t, axis=-1, keepdims=True)
    centered = t - mean
    var = jnp.mean(centered * centered, axis=-1, keepdims=True)
    inv = jax.lax.rsqrt(var + LN_EPS)
    y = centered * inv * g_ref[...].astype(jnp.float32) + beta_ref[...].astype(jnp.float32)

    # dense_1 (MXU) + bias; lane-dense (Cp = multiple of 128) output store.
    out = (jnp.dot(y.astype(w1_ref.dtype), w1_ref[...],
                   preferred_element_type=jnp.float32)
           + b1_ref[...].astype(jnp.float32))
    out_ref[...] = out.astype(out_ref.dtype)


def pooler_end_logits(hidden_states, start_positions, params, *, row_tile=512):
    """hidden_states: (B, S, H1), start_positions: (B, S, H2), H1+H2 == w0 in-dim."""
    w0, b0, gamma, beta, w1, b1 = (params["w0"], params["b0"], params["gamma"],
                                   params["beta"], params["w1"], params["b1"])
    B, S, H1 = hidden_states.shape
    H2 = start_positions.shape[-1]
    Hin, Hout = w0.shape
    assert Hin == H1 + H2, "concat([hidden_states, start_positions]) must match dense_0 in-features"
    C = w1.shape[1]

    M = B * S
    # Row tile: largest multiple of 8 up to `row_tile` that covers M; pad M so
    # every block is full (unmasked DMAs / stores).
    tm = min(row_tile, _round_up(M, 8))
    M_pad = _round_up(M, tm)
    # Lane-pad the tiny class dim so the output store is lane-dense.
    C_pad = _round_up(C, 128)

    # Flatten rows; keep native dtype (bf16 inputs are fine; accumulation is f32).
    hs2 = hidden_states.reshape(M, H1)
    sp2 = start_positions.reshape(M, H2)
    if M_pad != M:
        hs2 = jnp.pad(hs2, ((0, M_pad - M), (0, 0)))
        sp2 = jnp.pad(sp2, ((0, M_pad - M), (0, 0)))

    # Split dense_0 weight for the two half-K matmuls (fuses the concat).
    w0a = w0[:H1, :]
    w0b = w0[H1:, :]

    # Lane-pad dense_1 weight / bias with zeros (extra columns sliced off below).
    w1p = jnp.pad(w1, ((0, 0), (0, C_pad - C)))
    b1p = jnp.pad(b1, ((0, C_pad - C)))

    grid = (M_pad // tm,)

    # VMEM budget: double-buffered activation tiles + resident weights + output.
    itemsize = jnp.dtype(hidden_states.dtype).itemsize
    w_itemsize = jnp.dtype(w0.dtype).itemsize
    vmem_est = (
        2 * tm * (H1 + H2) * itemsize          # double-buffered input tiles
        + (H1 + H2) * Hout * w_itemsize        # w0 (split), resident
        + Hout * C_pad * w_itemsize            # w1 (padded), resident
        + 3 * Hout * 4 + C_pad * 4             # b0 / gamma / beta / b1
        + 2 * tm * C_pad * 4                   # double-buffered output tile
    )
    vmem_limit = int(min(max(2 * vmem_est, 16 << 20), 96 << 20))

    out = pl.pallas_call(
        _pooler_end_logits_kernel,
        out_shape=jax.ShapeDtypeStruct((M_pad, C_pad), jnp.float32),
        grid_spec=pltpu.PrefetchScalarGridSpec(
            num_scalar_prefetch=0,
            grid=grid,
            in_specs=[
                pl.BlockSpec((tm, H1), lambda i: (i, 0)),      # hidden_states tile
                pl.BlockSpec((tm, H2), lambda i: (i, 0)),      # start_positions tile
                pl.BlockSpec((H1, Hout), lambda i: (0, 0)),    # w0 top (resident)
                pl.BlockSpec((H2, Hout), lambda i: (0, 0)),    # w0 bottom (resident)
                pl.BlockSpec((1, Hout), lambda i: (0, 0)),     # b0
                pl.BlockSpec((1, Hout), lambda i: (0, 0)),     # gamma
                pl.BlockSpec((1, Hout), lambda i: (0, 0)),     # beta
                pl.BlockSpec((Hout, C_pad), lambda i: (0, 0)), # w1 (resident)
                pl.BlockSpec((1, C_pad), lambda i: (0, 0)),    # b1
            ],
            out_specs=pl.BlockSpec((tm, C_pad), lambda i: (i, 0)),
        ),
        compiler_params=pltpu.CompilerParams(
            dimension_semantics=("parallel",),   # shard row tiles across TCs (v7x)
            vmem_limit_bytes=vmem_limit,
        ),
    )(hs2, sp2, w0a, w0b,
      b0.reshape(1, Hout), gamma.reshape(1, Hout), beta.reshape(1, Hout),
      w1p, b1p.reshape(1, C_pad))

    return out[:M, :C].reshape(B, S, C)


def _reference(hidden_states, start_positions, params):
    x = jnp.concatenate([hidden_states, start_positions], axis=-1)
    x = x @ params["w0"] + params["b0"]
    x = jnp.tanh(x)
    mean = jnp.mean(x, axis=-1, keepdims=True)
    var = jnp.mean((x - mean) ** 2, axis=-1, keepdims=True)
    x = (x - mean) / jnp.sqrt(var + LN_EPS) * params["gamma"] + params["beta"]
    return x @ params["w1"] + params["b1"]


if __name__ == "__main__":
    B, S, HIDDEN, NUM_CLASSES = 2, 8, 32, 2

    key = jax.random.PRNGKey(0)
    ks = jax.random.split(key, 8)

    # Deterministic synthetic params matching the module __init__ shapes:
    #   dense_0: Linear(hidden, hidden); LayerNorm(hidden); dense_1: Linear(hidden, num_classes)
    # Weights stored in (in_features, out_features) layout.
    bound0 = 1.0 / (HIDDEN ** 0.5)
    params = {
        "w0": jax.random.uniform(ks[0], (HIDDEN, HIDDEN), jnp.float32, -bound0, bound0),
        "b0": jax.random.uniform(ks[1], (HIDDEN,), jnp.float32, -bound0, bound0),
        "gamma": jnp.ones((HIDDEN,), jnp.float32),
        "beta": jnp.zeros((HIDDEN,), jnp.float32),
        "w1": jax.random.uniform(ks[2], (HIDDEN, NUM_CLASSES), jnp.float32, -bound0, bound0),
        "b1": jax.random.uniform(ks[3], (NUM_CLASSES,), jnp.float32, -bound0, bound0),
    }

    hidden_states = jax.random.normal(ks[4], (B, S, HIDDEN // 2), jnp.float32)
    start_positions = jax.random.normal(ks[5], (B, S, HIDDEN // 2), jnp.float32)

    out = pooler_end_logits(hidden_states, start_positions, params)
    out = jax.block_until_ready(out)

    ref = _reference(hidden_states, start_positions, params)
    assert out.shape == (B, S, NUM_CLASSES)
    assert jnp.allclose(out, ref, atol=1e-4, rtol=1e-4), "mismatch vs reference"

    print("KERNEL_OK")
</pallas_src>

<mosaic_0001>
module attributes {stable_mosaic.version = 11 : i64} {
  func.func @_pooler_end_logits_kernel(%arg0: i32, %arg1: memref<16x16xf32, #tpu.memory_space<vmem>>, %arg2: memref<16x16xf32, #tpu.memory_space<vmem>>, %arg3: memref<16x32xf32, #tpu.memory_space<vmem>>, %arg4: memref<16x32xf32, #tpu.memory_space<vmem>>, %arg5: memref<1x32xf32, #tpu.memory_space<vmem>>, %arg6: memref<1x32xf32, #tpu.memory_space<vmem>>, %arg7: memref<1x32xf32, #tpu.memory_space<vmem>>, %arg8: memref<32x128xf32, #tpu.memory_space<vmem>>, %arg9: memref<1x128xf32, #tpu.memory_space<vmem>>, %arg10: memref<16x128xf32, #tpu.memory_space<vmem>>) attributes {dimension_semantics = [#tpu.dimension_semantics<parallel>], iteration_bounds = array<i64: 1>, scalar_prefetch = 0 : i64, scratch_operands = 0 : i64, tpu.core_type = #tpu.core_type<tc>, window_params = [{transform_indices = @transform_0, window_bounds = array<i64: 16, 16>}, {transform_indices = @transform_1, window_bounds = array<i64: 16, 16>}, {pipeline_mode = #tpu.pipeline_mode<synchronous>, transform_indices = @transform_2, window_bounds = array<i64: 16, 32>}, {pipeline_mode = #tpu.pipeline_mode<synchronous>, transform_indices = @transform_3, window_bounds = array<i64: 16, 32>}, {pipeline_mode = #tpu.pipeline_mode<synchronous>, transform_indices = @transform_4, window_bounds = array<i64: 1, 32>}, {pipeline_mode = #tpu.pipeline_mode<synchronous>, transform_indices = @transform_5, window_bounds = array<i64: 1, 32>}, {pipeline_mode = #tpu.pipeline_mode<synchronous>, transform_indices = @transform_6, window_bounds = array<i64: 1, 32>}, {pipeline_mode = #tpu.pipeline_mode<synchronous>, transform_indices = @transform_7, window_bounds = array<i64: 32, 128>}, {pipeline_mode = #tpu.pipeline_mode<synchronous>, transform_indices = @transform_8, window_bounds = array<i64: 1, 128>}, {transform_indices = @transform_9, window_bounds = array<i64: 16, 128>}]} {
    %c0 = arith.constant 0 : index
    %c0_0 = arith.constant 0 : index
    %0 = vector.load %arg1[%c0, %c0_0] : memref<16x16xf32, #tpu.memory_space<vmem>>, vector<16x16xf32>
    %c0_1 = arith.constant 0 : index
    %c0_2 = arith.constant 0 : index
    %1 = vector.load %arg3[%c0_1, %c0_2] : memref<16x32xf32, #tpu.memory_space<vmem>>, vector<16x32xf32>
    %cst = arith.constant dense<0.000000e+00> : vector<16x32xf32>
    %2 = tpu.matmul %0, %1, %cst {dimension_numbers = #tpu.dot_dimension_numbers<[1], [0], [0], [1], [0, 0, 1, 1], [], []>} : vector<16x16xf32>, vector<16x32xf32>, vector<16x32xf32> -> vector<16x32xf32>
    %c0_3 = arith.constant 0 : index
    %c0_4 = arith.constant 0 : index
    %3 = vector.load %arg2[%c0_3, %c0_4] : memref<16x16xf32, #tpu.memory_space<vmem>>, vector<16x16xf32>
    %c0_5 = arith.constant 0 : index
    %c0_6 = arith.constant 0 : index
    %4 = vector.load %arg4[%c0_5, %c0_6] : memref<16x32xf32, #tpu.memory_space<vmem>>, vector<16x32xf32>
    %cst_7 = arith.constant dense<0.000000e+00> : vector<16x32xf32>
    %5 = tpu.matmul %3, %4, %cst_7 {dimension_numbers = #tpu.dot_dimension_numbers<[1], [0], [0], [1], [0, 0, 1, 1], [], []>} : vector<16x16xf32>, vector<16x32xf32>, vector<16x32xf32> -> vector<16x32xf32>
    %6 = arith.addf %2, %5 : vector<16x32xf32>
    %c0_8 = arith.constant 0 : index
    %c0_9 = arith.constant 0 : index
    %7 = vector.load %arg5[%c0_8, %c0_9] : memref<1x32xf32, #tpu.memory_space<vmem>>, vector<1x32xf32>
    %8 = vector.broadcast %7 : vector<1x32xf32> to vector<16x32xf32>
    %9 = arith.addf %6, %8 : vector<16x32xf32>
    %10 = math.tanh %9 : vector<16x32xf32>
    %cst_10 = arith.constant dense<0.000000e+00> : vector<16xf32>
    %11 = vector.multi_reduction <add>, %10, %cst_10 [1] : vector<16x32xf32> to vector<16xf32>
    %12 = vector.shape_cast %11 : vector<16xf32> to vector<16x1xf32>
    %cst_11 = arith.constant 3.200000e+01 : f32
    %13 = vector.broadcast %cst_11 : f32 to vector<16x1xf32>
    %14 = arith.divf %12, %13 : vector<16x1xf32>
    %15 = vector.broadcast %14 : vector<16x1xf32> to vector<16x32xf32>
    %16 = arith.subf %10, %15 : vector<16x32xf32>
    %17 = arith.mulf %16, %16 : vector<16x32xf32>
    %cst_12 = arith.constant dense<0.000000e+00> : vector<16xf32>
    %18 = vector.multi_reduction <add>, %17, %cst_12 [1] : vector<16x32xf32> to vector<16xf32>
    %19 = vector.shape_cast %18 : vector<16xf32> to vector<16x1xf32>
    %cst_13 = arith.constant 3.200000e+01 : f32
    %20 = vector.broadcast %cst_13 : f32 to vector<16x1xf32>
    %21 = arith.divf %19, %20 : vector<16x1xf32>
    %cst_14 = arith.constant 9.99999974E-6 : f32
    %22 = vector.broadcast %cst_14 : f32 to vector<16x1xf32>
    %23 = arith.addf %21, %22 : vector<16x1xf32>
    %24 = math.rsqrt %23 : vector<16x1xf32>
    %25 = vector.broadcast %24 : vector<16x1xf32> to vector<16x32xf32>
    %26 = arith.mulf %16, %25 : vector<16x32xf32>
    %c0_15 = arith.constant 0 : index
    %c0_16 = arith.constant 0 : index
    %27 = vector.load %arg6[%c0_15, %c0_16] : memref<1x32xf32, #tpu.memory_space<vmem>>, vector<1x32xf32>
    %28 = vector.broadcast %27 : vector<1x32xf32> to vector<16x32xf32>
    %29 = arith.mulf %26, %28 : vector<16x32xf32>
    %c0_17 = arith.constant 0 : index
    %c0_18 = arith.constant 0 : index
    %30 = vector.load %arg7[%c0_17, %c0_18] : memref<1x32xf32, #tpu.memory_space<vmem>>, vector<1x32xf32>
    %31 = vector.broadcast %30 : vector<1x32xf32> to vector<16x32xf32>
    %32 = arith.addf %29, %31 : vector<16x32xf32>
    %c0_19 = arith.constant 0 : index
    %c0_20 = arith.constant 0 : index
    %33 = vector.load %arg8[%c0_19, %c0_20] : memref<32x128xf32, #tpu.memory_space<vmem>>, vector<32x128xf32>
    %cst_21 = arith.constant dense<0.000000e+00> : vector<16x128xf32>
    %34 = tpu.matmul %32, %33, %cst_21 {dimension_numbers = #tpu.dot_dimension_numbers<[1], [0], [0], [1], [0, 0, 1, 1], [], []>} : vector<16x32xf32>, vector<32x128xf32>, vector<16x128xf32> -> vector<16x128xf32>
    %c0_22 = arith.constant 0 : index
    %c0_23 = arith.constant 0 : index
    %35 = vector.load %arg9[%c0_22, %c0_23] : memref<1x128xf32, #tpu.memory_space<vmem>>, vector<1x128xf32>
    %36 = vector.broadcast %35 : vector<1x128xf32> to vector<16x128xf32>
    %37 = arith.addf %34, %36 : vector<16x128xf32>
    %c0_24 = arith.constant 0 : index
    %c0_25 = arith.constant 0 : index
    %38 = vector.load %arg10[%c0_24, %c0_25] : memref<16x128xf32, #tpu.memory_space<vmem>>, vector<16x128xf32>
    tpu.vector_store %arg10[%c0_24, %c0_25], %37 {strides = array<i32>} : memref<16x128xf32, #tpu.memory_space<vmem>>, vector<16x128xf32>,
    return
  }
  func.func @transform_0(%arg0: i32) -> (i32, i32) {
    %c0_i32 = arith.constant 0 : i32
    %c0_i32_0 = arith.constant 0 : i32
    return %arg0, %c0_i32 : i32, i32
  }
  func.func @transform_1(%arg0: i32) -> (i32, i32) {
    %c0_i32 = arith.constant 0 : i32
    %c0_i32_0 = arith.constant 0 : i32
    return %arg0, %c0_i32 : i32, i32
  }
  func.func @transform_2(%arg0: i32) -> (i32, i32) {
    %c0_i32 = arith.constant 0 : i32
    %c0_i32_0 = arith.constant 0 : i32
    %c0_i32_1 = arith.constant 0 : i32
    return %c0_i32, %c0_i32_0 : i32, i32
  }
  func.func @transform_3(%arg0: i32) -> (i32, i32) {
    %c0_i32 = arith.constant 0 : i32
    %c0_i32_0 = arith.constant 0 : i32
    %c0_i32_1 = arith.constant 0 : i32
    return %c0_i32, %c0_i32_0 : i32, i32
  }
  func.func @transform_4(%arg0: i32) -> (i32, i32) {
    %c0_i32 = arith.constant 0 : i32
    %c0_i32_0 = arith.constant 0 : i32
    %c0_i32_1 = arith.constant 0 : i32
    return %c0_i32, %c0_i32_0 : i32, i32
  }
  func.func @transform_5(%arg0: i32) -> (i32, i32) {
    %c0_i32 = arith.constant 0 : i32
    %c0_i32_0 = arith.constant 0 : i32
    %c0_i32_1 = arith.constant 0 : i32
    return %c0_i32, %c0_i32_0 : i32, i32
  }
  func.func @transform_6(%arg0: i32) -> (i32, i32) {
    %c0_i32 = arith.constant 0 : i32
    %c0_i32_0 = arith.constant 0 : i32
    %c0_i32_1 = arith.constant 0 : i32
    return %c0_i32, %c0_i32_0 : i32, i32
  }
  func.func @transform_7(%arg0: i32) -> (i32, i32) {
    %c0_i32 = arith.constant 0 : i32
    %c0_i32_0 = arith.constant 0 : i32
    %c0_i32_1 = arith.constant 0 : i32
    return %c0_i32, %c0_i32_0 : i32, i32
  }
  func.func @transform_8(%arg0: i32) -> (i32, i32) {
    %c0_i32 = arith.constant 0 : i32
    %c0_i32_0 = arith.constant 0 : i32
    %c0_i32_1 = arith.constant 0 : i32
    return %c0_i32, %c0_i32_0 : i32, i32
  }
  func.func @transform_9(%arg0: i32) -> (i32, i32) {
    %c0_i32 = arith.constant 0 : i32
    %c0_i32_0 = arith.constant 0 : i32
    return %arg0, %c0_i32 : i32, i32
  }
}

</mosaic_0001>

<bundles_post_ra>
// kernel: tpu_custom_call.1
= control target key start
LH: loop header
LB: loop body
LE: loop exit
PB: predicated region body
PF: predicated region fallthrough
CT: control target
= control target key end

     0   :  { %14 = vsyncpa [#allocation3], 0  ;;  %s849_s0 = inlined_call_operand.hbm [shape: f32[16,16], index: 0, kind: input, shape index: {}]   ;;  %s850_s1 = inlined_call_operand.hbm [shape: f32[16,16], index: 1, kind: input, shape index: {}]   ;;  %s851_s2 = inlined_call_operand.hbm [shape: f32[16,32], index: 2, kind: input, shape index: {}]   ;;  %s852_s3 = inlined_call_operand.hbm [shape: f32[16,32], index: 3, kind: input, shape index: {}]   ;;  %s853_s4 = inlined_call_operand.vmem [shape: f32[1,32], index: 4, kind: input, shape index: {}]   ;;  %s854_s5 = inlined_call_operand.vmem [shape: f32[1,32], index: 5, kind: input, shape index: {}]   ;;  %s855_s6 = inlined_call_operand.vmem [shape: f32[1,32], index: 6, kind: input, shape index: {}]   ;;  %s856_s7 = inlined_call_operand.hbm [shape: f32[32,128], index: 7, kind: input, shape index: {}]   ;;  %s857_s8 = inlined_call_operand.vmem [shape: f32[1,128], index: 8, kind: input, shape index: {}]   ;;  %s858_s9 = inlined_call_operand.hbm [shape: f32[16,128], index: 9, kind: output, shape index: {}]  }
   0x1   :  { %15 = vsyncpa [#allocation6], 0 }
   0x2   :  { %16 = vsyncpa [#allocation9], 0 }
   0x3   :  { %17 = vsyncpa [#allocation4], 0  ;;  %s665_s30 = smov [#allocation5]   ;;  %s666_s11 = smov [#allocation8]  }
   0x4   :  { %s35_s10 = sshll.u32 %s665_s30, 4  ;;  %s59_s12 = sshll.u32 %s666_s11, 4  ;;  %s36_s10 = int_to_ptr.vmem [resolvable:$true] %s35_s10  ;;  %s723_s12 = int_to_ptr.vmem [resolvable:$true] %s59_s12 }
   0x5   :  { %s525_s15 = scalar_lea.hbm %s850_s1, 256 }
   0x6   :  { %p526_p0 = scmp.ne.s32.totalorder %s850_s1, %s525_s15  ;;  %p529_p1 = scmp.lt.u32.totalorder %s525_s15, %s850_s1 }
   0x8   :  { %p531_p2 = pnand %p529_p1, %p526_p0 }
   0xa   :  { %534 = shalt.err (!%p531_p2)
}
   0xb   :  { %s535_s20 = scalar_lea.vmem %s36_s10, 256  ;;  %p540_p4 = scmp.lt.s32.totalorder %s36_s10, %s36_s10 }
   0xc   :  { %p536_p3 = scmp.ne.s32.totalorder %s36_s10, %s535_s20  ;;  %p541_p5 = scmp.lt.s32.totalorder %s535_s20, %s535_s20 }
   0xe   :  { %p542_p6 = por %p541_p5, %p540_p4 }
  0x10   :  { %p543_p7 = pnand %p542_p6, %p536_p3 }
  0x12   :  { %546 = shalt.err (!%p543_p7)
}
  0x13   :  { %s667_s21 = smov 128   ;;  %s668_s22 = smov 8  }
  0x14   :  { %41 = dma.hbm_to_vmem [thread:$0]  %s850_s1, 256, %s36_s10, [#allocation6], %s667_s21, %s667_s21, %s668_s22  }
  0x15   :  { %s547_s27 = scalar_lea.hbm %s852_s3, 256 }
  0x16   :  { %p548_p8 = scmp.ne.s32.totalorder %s852_s3, %s547_s27  ;;  %p551_p9 = scmp.lt.u32.totalorder %s547_s27, %s852_s3 }
  0x18   :  { %p553_p10 = pnand %p551_p9, %p548_p8 }
  0x1a   :  { %556 = shalt.err (!%p553_p10)
}
  0x1b   :  { %s557_s13 = scalar_lea.vmem %s723_s12, 256  ;;  %p562_p12 = scmp.lt.s32.totalorder %s723_s12, %s723_s12 }
  0x1c   :  { %p558_p11 = scmp.ne.s32.totalorder %s723_s12, %s557_s13  ;;  %p563_p13 = scmp.lt.s32.totalorder %s557_s13, %s557_s13 }
  0x1e   :  { %p564_p0 = por %p563_p13, %p562_p12 }
  0x20   :  { %p565_p1 = pnand %p564_p0, %p558_p11 }
  0x22   :  { %568 = shalt.err (!%p565_p1)
}
  0x23   :  { %65 = dma.hbm_to_vmem [thread:$0]  %s852_s3, 256, %s723_s12, [#allocation9], %s667_s21, %s667_s21, %s668_s22  }
  0x24   :  { %s669_s14 = smov [#allocation2]   ;;  %s670_s16 = smov [#allocation7]  }
  0x25   :  { %s23_s15 = sshll.u32 %s669_s14, 4  ;;  %s47_s17 = sshll.u32 %s670_s16, 4  ;;  %s24_s15 = int_to_ptr.vmem [resolvable:$true] %s23_s15  ;;  %s760_s17 = int_to_ptr.vmem [resolvable:$true] %s47_s17 }
  0x26   :  { %s569_s20 = scalar_lea.hbm %s849_s0, 256 }
  0x27   :  { %p570_p2 = scmp.ne.s32.totalorder %s849_s0, %s569_s20  ;;  %p573_p3 = scmp.lt.u32.totalorder %s569_s20, %s849_s0 }
  0x29   :  { %p575_p4 = pnand %p573_p3, %p570_p2 }
  0x2b   :  { %578 = shalt.err (!%p575_p4)
}
  0x2c   :  { %s579_s3 = scalar_lea.vmem %s24_s15, 256  ;;  %p584_p6 = scmp.lt.s32.totalorder %s24_s15, %s24_s15 }
  0x2d   :  { %p580_p5 = scmp.ne.s32.totalorder %s24_s15, %s579_s3  ;;  %p585_p7 = scmp.lt.s32.totalorder %s579_s3, %s579_s3 }
  0x2f   :  { %p586_p8 = por %p585_p7, %p584_p6 }
  0x31   :  { %p587_p9 = pnand %p586_p8, %p580_p5 }
  0x33   :  { %590 = shalt.err (!%p587_p9)
}
  0x34   :  { %29 = dma.hbm_to_vmem [thread:$0]  %s849_s0, 256, %s24_s15, [#allocation3], %s667_s21, %s667_s21, %s668_s22  }
  0x35   :  { %s591_s30 = scalar_lea.hbm %s851_s2, 256 }
  0x36   :  { %p592_p10 = scmp.ne.s32.totalorder %s851_s2, %s591_s30  ;;  %p595_p11 = scmp.lt.u32.totalorder %s591_s30, %s851_s2 }
  0x38   :  { %p597_p12 = pnand %p595_p11, %p592_p10 }
  0x3a   :  { %600 = shalt.err (!%p597_p12)
}
  0x3b   :  { %s601_s14 = scalar_lea.vmem %s760_s17, 256  ;;  %p606_p0 = scmp.lt.s32.totalorder %s760_s17, %s760_s17 }
  0x3c   :  { %p602_p13 = scmp.ne.s32.totalorder %s760_s17, %s601_s14  ;;  %p607_p1 = scmp.lt.s32.totalorder %s601_s14, %s601_s14 }
  0x3e   :  { %p608_p2 = por %p607_p1, %p606_p0 }
  0x40   :  { %p609_p3 = pnand %p608_p2, %p602_p13 }
  0x42   :  { %612 = shalt.err (!%p609_p3)
}
  0x43   :  { %53 = dma.hbm_to_vmem [thread:$0]  %s851_s2, 256, %s760_s17, [#allocation6], %s667_s21, %s667_s21, %s668_s22  }
  0x44   :  { %s671_s16 = smov [#allocation10]   ;;  %s613_s23 = scalar_lea.hbm %s856_s7, 512 }
  0x45   :  { %s77_s18 = sshll.u32 %s671_s16, 4  ;;  %p614_p4 = scmp.ne.s32.totalorder %s856_s7, %s613_s23  ;;  %s78_s18 = int_to_ptr.vmem [resolvable:$true] %s77_s18 }
  0x46   :  { %p617_p5 = scmp.lt.u32.totalorder %s613_s23, %s856_s7 }
  0x48   :  { %p619_p6 = pnand %p617_p5, %p614_p4 }
  0x4a   :  { %622 = shalt.err (!%p619_p6)
}
  0x4b   :  { %s623_s12 = scalar_lea.vmem %s78_s18, 512  ;;  %p628_p8 = scmp.lt.s32.totalorder %s78_s18, %s78_s18 }
  0x4c   :  { %p624_p7 = scmp.ne.s32.totalorder %s78_s18, %s623_s12  ;;  %p629_p9 = scmp.lt.s32.totalorder %s623_s12, %s623_s12 }
  0x4e   :  { %p630_p10 = por %p629_p9, %p628_p8 }
  0x50   :  { %p631_p11 = pnand %p630_p10, %p624_p7 }
  0x52   :  { %634 = shalt.err (!%p631_p11)
}
  0x53   :  { %83 = dma.hbm_to_vmem [thread:$0]  %s856_s7, 512, %s78_s18, [#allocation9], %s667_s21, %s667_s21, %s668_s22  }
  0x54   :  { %657 = dma.done.wait [#allocation3], 256  }
  0x55   :  { %658 = vsyncadd [#allocation3], 4294967040 }
  0x56   :  { %659 = dma.done.wait [#allocation6], 512  }
  0x57   :  { %660 = vsyncadd [#allocation6], 4294966784 }
  0x58   :  { %661 = dma.done.wait [#allocation9], 768  }
  0x59   :  { %662 = vsyncadd [#allocation9], 4294966528  ;;  %vm109_vm0 = vcmask 130048   ;;  %v107_v0 = vld [vmem:[#allocation8] sm:$0xff]  ;;  %v108_v1 = vld [vmem:[#allocation8 + $0x8] sm:$0xff]  ;;  %vm283_vm1 = vcmask 261120  }
  0x5a   :  { %v105_v2 = vld [vmem:[#allocation5] sm:$0xff]  ;;  %v491_v3 = vpack.c.bf16 %v108_v1, %v107_v0  ;;  %v103_v4 = vld [vmem:[#allocation7] sm:$0xff]  ;;  %v104_v5 = vld [vmem:[#allocation7 + $0x8] sm:$0xff] }
  0x5b   :  { %470 = vmatprep.mubr.msk.f32.mxu0 %vm109_vm0, %v105_v2  ;;  %v495_v6 = vpack.c.bf16 %v104_v5, %v103_v4  ;;  %v106_v7 = vld [vmem:[#allocation5 + $0x8] sm:$0xff]  ;;  %v101_v8 = vld [vmem:[#allocation2] sm:$0xff]  ;;  %v102_v9 = vld [vmem:[#allocation2 + $0x8] sm:$0xff] }
  0x5c   :  { %492 = vmatprep.subr.bf16.mxu0 %v491_v3  ;;  %v446_v10 = vld [vmem:[%s853_s4] ss:$0 sm:$0xff]  ;;  %v330_v30 = vld [vmem:[#allocation10 + $0x8] sm:$0xff]  ;;  %v331_v31 = vld [vmem:[#allocation10 + $0x10] sm:$0xff] }
  0x5d   :  { %494 = vmatpush3.bf16.msra.mxu0 %v491_v3  ;;  %v329_v29 = vld [vmem:[#allocation10] sm:$0xff]  ;;  %v332_v33 = vld [vmem:[#allocation10 + $0x18] sm:$0xff] }
  0x5e   :  { %496 = vmatprep.subr.bf16.mxu0 %v495_v6  ;;  %v499_v32 = vpack.c.bf16 %v330_v30, %v329_v29  ;;  %v503_v34 = vpack.c.bf16 %v332_v33, %v331_v31  ;;  %v447_v42 = vld [vmem:[%s854_s5] ss:$0 sm:$0xff]  ;;  %s672_s5 = smov [#allocation11]  }
  0x5f   :  { %v448_v44 = vld [vmem:[%s855_s6] ss:$0 sm:$0xff]  ;;  %s428_s1 = sshll.u32 %s672_s5, 4  ;;  %s429_s1 = int_to_ptr.vmem [resolvable:$true] %s428_s1 }
  0x60   :  { %471 = vmatmul.mubr.msk.f32.vlgmr.msra.gmra.mrb[0].mxu0 %vm109_vm0, %v106_v7  ;;  %500 = vmatprep.subr.bf16.mxu1 %v499_v32  ;;  %v449_v51 = vld [vmem:[%s857_s8] ss:$0 sm:$0xff]  ;;  %s635_s6 = scalar_lea.vmem %s429_s1, 256  ;;  %p640_p13 = scmp.lt.s32.totalorder %s429_s1, %s429_s1 }
  0x61   :  { %498 = vmatpush3.bf16.msra.mxu0 %v495_v6  ;;  %477 = vmatprep.mubr.msk.f32.mxu0 %vm109_vm0, %v101_v8  ;;  %p636_p12 = scmp.ne.s32.totalorder %s429_s1, %s635_s6  ;;  %p641_p0 = scmp.lt.s32.totalorder %s635_s6, %s635_s6 }
  0x62   :  { %502 = vmatpush3.bf16.msra.mxu1 %v499_v32 }
  0x63   :  { %504 = vmatprep.subr.bf16.mxu1 %v503_v34  ;;  %p642_p1 = por %p641_p0, %p640_p13 }
  0x65   :  { %p643_p2 = pnand %p642_p1, %p636_p12 }
  0x66   :  { %506 = vmatpush3.bf16.msra.mxu1 %v503_v34 }
  0x68   :  { %478 = vmatmul.mubr.msk.f32.vlgmr.msra.gmra.mrb[0].mxu0 %vm109_vm0, %v102_v9 }
 0x13b   :  { %v479_v11 = vpop.f32.mrb[0].mxu0 }
 0x13c   :  { %v263_v12 = vpop.f32.mrb[1].mxu0  ;;  %v280_v13 = vadd.f32 %v479_v11, %v446_v10 }
 0x13d   :  { %v279_v14 = vadd.f32 %v446_v10, %v263_v12 }
 0x13f   :  { %517 = vtanh.f32 %v279_v14 }
 0x140   :  { %519 = vtanh.f32 %v280_v13 }
 0x149   :  { %v518_v15 = vpop.eup %517 }
 0x14a   :  { %v284_v16 = vsel %vm283_vm1, %v518_v15, 0.0  ;;  %v520_v17 = vpop.eup %519 }
 0x14b   :  { %285 = vadd.xlane.f32.xlu0 %v284_v16  ;;  %v287_v18 = vsel %vm283_vm1, %v520_v17, 0.0 }
 0x14f   :  { %288 = vadd.xlane.f32.xlu0 %v287_v18 }
 0x1d8   :  { %v286_v19 = vpop.xlane.xlu0 %285 }
 0x1d9   :  { %v291_v20 = vmul.f32 0.03125, %v286_v19 }
 0x1db   :  { %v293_v21 = vsub.f32 %v518_v15, %v291_v20 }
 0x1dc   :  { %v289_v22 = vpop.xlane.xlu0 %288 }
 0x1dd   :  { %v292_v23 = vmul.f32 0.03125, %v289_v22  ;;  %v295_v24 = vmul.f32 %v293_v21, %v293_v21 }
 0x1df   :  { %v294_v25 = vsub.f32 %v520_v17, %v292_v23  ;;  %v297_v26 = vsel %vm283_vm1, %v295_v24, 0.0 }
 0x1e0   :  { %298 = vadd.xlane.f32.xlu1 %v297_v26 }
 0x1e1   :  { %v296_v27 = vmul.f32 %v294_v25, %v294_v25 }
 0x1e3   :  { %v300_v28 = vsel %vm283_vm1, %v296_v27, 0.0 }
 0x1e4   :  { %301 = vadd.xlane.f32.xlu1 %v300_v28 }
 0x26d   :  { %v299_v35 = vpop.xlane.xlu1 %298 }
 0x26e   :  { %v303_v36 = vmul.f32 0.03125, %v299_v35 }
 0x270   :  { %v305_v37 = vadd.f32 1e-05, %v303_v36 }
 0x271   :  { %v302_v38 = vpop.xlane.xlu1 %301 }
 0x272   :  { %521 = vrsqrt.f32 %v305_v37  ;;  %v304_v39 = vmul.f32 0.03125, %v302_v38 }
 0x274   :  { %v306_v40 = vadd.f32 1e-05, %v304_v39 }
 0x276   :  { %523 = vrsqrt.f32 %v306_v40 }
 0x27c   :  { %v522_v41 = vpop.eup %521 }
 0x27d   :  { %v309_v43 = vmul.f32 %v522_v41, %v293_v21 }
 0x27f   :  { %v318_v45 = vmul.f32 %v447_v42, %v309_v43 }
 0x280   :  { %v524_v46 = vpop.eup %523 }
 0x281   :  { %v310_v47 = vmul.f32 %v524_v46, %v294_v25  ;;  %v327_v48 = vadd.f32 %v448_v44, %v318_v45 }
 0x283   :  { %v319_v49 = vmul.f32 %v447_v42, %v310_v47  ;;  %488 = vmatprep.mubr.msk.f32.mxu1 %vm283_vm1, %v327_v48 }
 0x285   :  { %v328_v50 = vadd.f32 %v448_v44, %v319_v49 }
 0x287   :  { %489 = vmatmul.mubr.msk.f32.vlgmr.msra.gmra.mrb[0].mxu1 %vm283_vm1, %v328_v50 }
 0x35a   :  { %v490_v52 = vpop.f32.mrb[0].mxu1 }
 0x35b   :  { %v418_v53 = vadd.f32 %v490_v52, %v449_v51  ;;  %v412_v54 = vpop.f32.mrb[1].mxu1 }
 0x35c   :  { %v413_v55 = vadd.f32 %v449_v51, %v412_v54 }
 0x35d   :  { %422 = vst [vmem:[#allocation11 + $0x8] sm:$0xff] %v418_v53 }
 0x35e   :  { %421 = vst [vmem:[#allocation11] sm:$0xff] %v413_v55 }
 0x35f   :  { %646 = shalt.err (!%p643_p2)
}
 0x360   :  { %s647_s8 = scalar_lea.hbm %s858_s9, 256 }
 0x361   :  { %p648_p3 = scmp.ne.s32.totalorder %s858_s9, %s647_s8  ;;  %p651_p4 = scmp.lt.u32.totalorder %s647_s8, %s858_s9 }
 0x363   :  { %p653_p5 = pnand %p651_p4, %p648_p3 }
 0x365   :  { %656 = shalt.err (!%p653_p5)
}
 0x366   :  { %434 = dma.vmem_to_hbm [thread:$0]  %s429_s1, 256, %s858_s9, [#allocation4], %s667_s21, %s667_s21, %s668_s22  }
 0x367   :  { %663 = dma.done.wait [#allocation4], 256  }
 0x368   :  { %664 = vsyncadd [#allocation4], 4294967040 }
 0x369   :  { %438 = vsyncpa [#allocation3], 1 }
 0x36a   :  { %439 = vsyncpa [#allocation6], 1 }
 0x36b   :  { %440 = vsyncpa [#allocation9], 1 }
 0x36c   :  { %441 = vsyncpa [#allocation4], 1 }

</bundles_post_ra>
